<compile_context>
chip_gen: v6e
topology: v6e:2x2x1
jax: 0.10.0
libtpu: 0.0.40
codegen_flags: <defaults>
</compile_context>

<pallas_src>
import jax
import jax.numpy as jnp
from jax import lax
from jax.experimental import pallas as pl
from jax.experimental.pallas import tpu as pltpu

_LANES = 128                 # batch is laid out lane-dense (last dim = 128 lanes)
_MAX_TILE_ROWS = 4096        # 4096*128 int32 = 2 MiB/tile; in+out double-buffered
                             # = 8 MiB VMEM -> fits v5e 16 MiB / v6e-v7x 32 MiB.
_LOOP_MAX_CLASSES = 32       # <=32 classes: SMEM compare/select loop stays below
                             # the HBM roofline; above: VMEM-table gather kernel.
_PALLAS_MIN_ELEMENTS = 64 * 1024   # below this, a plain XLA gather beats the
                                   # pallas_call dispatch + re-layout cost.


# --------------------------------------------------------------------------- #
# Kernels
# --------------------------------------------------------------------------- #
def _select_loop_kernel(perm_ref, labels_ref, out_ref):
    """out[r, l] = perm[labels[r, l]] via an O(C) compare/select accumulator.

    perm_ref   : SMEM (C,)        int32  (scalar-prefetched permutation table)
    labels_ref : VMEM (TR, 128)   int32  (lane-dense batch tile)
    out_ref    : VMEM (TR, 128)   int32

    Pure VALU work (no (B, C) one-hot, no XLU reduction).  Only selected for
    small C (<= _LOOP_MAX_CLASSES) where 2 VALU ops/element/class stays under
    the HBM roofline; larger C goes through `_gather_kernel` instead.
    Out-of-range labels produce 0 (no class matches).
    """
    labels = labels_ref[...]
    C = perm_ref.shape[0]

    def body(c, acc):
        return jnp.where(labels == c, perm_ref[c], acc)

    # Full unroll for tiny C (static SMEM reads); partial unroll keeps LLO
    # scheduling visibility without code-size blow-up if this path is ever
    # used for larger C.
    unroll = True if C <= 32 else 8
    out_ref[...] = lax.fori_loop(0, C, body, jnp.zeros_like(labels),
                                 unroll=unroll)


def _gather_kernel(perm_ref, labels_ref, out_ref):
    """out[r, l] = perm[labels[r, l]] via a VMEM-resident table gather.

    perm_ref   : VMEM (1, C_pad)  int32  (table padded to a lane multiple)
    labels_ref : VMEM (TR, 128)   int32
    out_ref    : VMEM (TR, 128)   int32

    Memory-bound for any class count: no O(C) VALU work and no (B, C)
    intermediate.  Labels are clamped into the padded table, so out-of-range
    labels yield a clamped lookup instead of an error.
    """
    table = perm_ref[0]                                  # (C_pad,)
    idx = jnp.clip(labels_ref[...], 0, table.shape[0] - 1)
    # TODO(synk): if Mosaic rejects this 1-D-table gather lowering for a given
    # C, fall back to the XLA gather outside the kernel (still memory-bound).
    out_ref[...] = jnp.take(table, idx, axis=0)


# --------------------------------------------------------------------------- #
# Wrappers
# --------------------------------------------------------------------------- #
def _pallas_permute_2d(labels_2d: jnp.ndarray, perm: jnp.ndarray) -> jnp.ndarray:
    """Run the Pallas kernel on a lane-dense (rows, 128) int32 label array."""
    rows = labels_2d.shape[0]
    C = perm.shape[0]

    # Tile selection: ~half the rows (rounded to a sublane multiple of 8),
    # capped at _MAX_TILE_ROWS.  Big tiles amortize the ~0.35 us per-grid-step
    # overhead; >=2 grid steps let ("parallel",) shard across v7x's two TCs.
    if rows <= _MAX_TILE_ROWS and rows % 8 != 0:
        tile_rows = rows                      # full-extent block: always legal
    else:
        tile_rows = min(_MAX_TILE_ROWS, max(8, ((rows // 2 + 7) // 8) * 8))
    n_tiles = pl.cdiv(rows, tile_rows)

    data_spec = pl.BlockSpec((tile_rows, _LANES), lambda i, *_: (i, 0))
    out_shape = jax.ShapeDtypeStruct((rows, _LANES), jnp.int32)
    compiler_params = pltpu.CompilerParams(
        dimension_semantics=("parallel",))    # v7x: split grid across 2 TCs

    if C <= _LOOP_MAX_CLASSES:
        # Small C: scalar-prefetched SMEM table + compare/select loop.
        return pl.pallas_call(
            _select_loop_kernel,
            out_shape=out_shape,
            grid_spec=pltpu.PrefetchScalarGridSpec(
                num_scalar_prefetch=1,        # perm table -> SMEM
                grid=(n_tiles,),
                in_specs=[data_spec],
                out_specs=data_spec,
            ),
            compiler_params=compiler_params,
        )(perm, labels_2d)

    # Larger C: VMEM-resident table + in-kernel gather (memory-bound for any C,
    # and avoids the next_pow2(4C)-byte SMEM padding of the prefetched table).
    c_pad = ((C + _LANES - 1) // _LANES) * _LANES
    perm_padded = jnp.zeros((1, c_pad), jnp.int32).at[0, :C].set(perm)  # tiny
    perm_spec = pl.BlockSpec((1, c_pad), lambda i, *_: (0, 0))
    return pl.pallas_call(
        _gather_kernel,
        out_shape=out_shape,
        grid_spec=pltpu.PrefetchScalarGridSpec(
            num_scalar_prefetch=0,
            grid=(n_tiles,),
            in_specs=[perm_spec, data_spec],
            out_specs=data_spec,
        ),
        compiler_params=compiler_params,
    )(perm_padded, labels_2d)


def permute_labels(labels: jnp.ndarray, perm: jnp.ndarray,
                   *, force_pallas: bool = False) -> jnp.ndarray:
    """Batched label permutation out[i] = perm[labels[i]].

    Dispatch:
      * small batches (< ~64K labels) -> plain XLA gather: the pallas_call
        dispatch + (rows, 128) re-layout costs more than the op itself.
      * large batches -> lane-dense Pallas kernel over the 128-aligned prefix
        (a free reshape, no padding copy); a <128-element misaligned tail is a
        tiny XLA gather, so the wrapper never pads or re-copies the label array.
    """
    labels = jnp.asarray(labels)
    orig_shape = labels.shape
    labels_flat = labels.reshape(-1).astype(jnp.int32)
    perm = jnp.asarray(perm).astype(jnp.int32)
    B = labels_flat.shape[0]

    if not force_pallas and B < _PALLAS_MIN_ELEMENTS:
        return jnp.take(perm, labels_flat, axis=0).reshape(orig_shape)

    main = (B // _LANES) * _LANES
    if main == B:
        # Aligned: free (rows, 128) view, single kernel pass, no extra copies.
        out = _pallas_permute_2d(labels_flat.reshape(-1, _LANES), perm)
        return out.reshape(orig_shape)

    parts = []
    if main:
        out_main = _pallas_permute_2d(
            labels_flat[:main].reshape(-1, _LANES), perm)
        parts.append(out_main.reshape(main))
    # Misaligned tail (<128 labels): tiny XLA gather instead of whole-array pad.
    parts.append(jnp.take(perm, labels_flat[main:], axis=0))
    out = parts[0] if len(parts) == 1 else jnp.concatenate(parts)
    return out.reshape(orig_shape)


class LabelPermuteTransform:
    """JAX/Pallas port of the PyTorch LabelPermuteTransform module."""

    def __init__(self, nclasses: int, seed=None):
        self.nclasses = nclasses
        key = jax.random.PRNGKey(0 if seed is None else seed)
        self.label_permutation = jax.random.permutation(
            key, jnp.arange(nclasses, dtype=jnp.int32))

    def forward(self, y):
        # Scalar path: exact PyTorch semantics (assert + table lookup).  A
        # pallas_call for 4 bytes of output is pure dispatch overhead.
        if isinstance(y, int) or getattr(y, "ndim", 1) == 0:
            assert 0 <= int(y) < self.nclasses
            return self.label_permutation[int(y)]
        # Batched extension: permute an array of labels.
        return permute_labels(jnp.asarray(y), self.label_permutation)

    __call__ = forward


if __name__ == "__main__":
    nclasses = 10
    transform = LabelPermuteTransform(nclasses, seed=0)
    key = jax.random.PRNGKey(0)

    # 1) Pallas path (lane-dense (rows, 128) layout; forced so the kernel runs
    #    even though this demo batch is below the small-batch bypass size).
    labels = jax.random.randint(key, (1024,), 0, nclasses, dtype=jnp.int32)
    out = jax.block_until_ready(
        permute_labels(labels, transform.label_permutation, force_pallas=True))
    ref = transform.label_permutation[labels]
    assert jnp.array_equal(out, ref), "Pallas path mismatch"

    # 2) Small-batch bypass (plain XLA gather) with a misaligned size.
    labels_small = jax.random.randint(key, (37,), 0, nclasses, dtype=jnp.int32)
    out_small = jax.block_until_ready(transform(labels_small))
    assert jnp.array_equal(out_small, transform.label_permutation[labels_small])

    # 3) Scalar forward (original PyTorch semantics; bypasses Pallas by design).
    y = 3
    out_scalar = jax.block_until_ready(transform(y))
    assert int(out_scalar) == int(transform.label_permutation[y])

    print("KERNEL_OK")
</pallas_src>

<mosaic_0001>
module attributes {stable_mosaic.version = 11 : i64} {
  func.func @_select_loop_kernel(%arg0: i32, %arg1: memref<10xi32, #tpu.memory_space<smem>>, %arg2: memref<8x128xi32, #tpu.memory_space<vmem>>, %arg3: memref<8x128xi32, #tpu.memory_space<vmem>>) attributes {dimension_semantics = [#tpu.dimension_semantics<parallel>], iteration_bounds = array<i64: 1>, scalar_prefetch = 1 : i64, scratch_operands = 0 : i64, tpu.core_type = #tpu.core_type<tc>, window_params = [{transform_indices = @transform_0, window_bounds = array<i64: 8, 128>}, {transform_indices = @transform_1, window_bounds = array<i64: 8, 128>}]} {
    %c0 = arith.constant 0 : index
    %c0_0 = arith.constant 0 : index
    %0 = vector.load %arg2[%c0, %c0_0] : memref<8x128xi32, #tpu.memory_space<vmem>>, vector<8x128xi32>
    %c0_i32 = arith.constant 0 : i32
    %1 = vector.broadcast %c0_i32 : i32 to vector<8x128xi32>
    %c0_i32_1 = arith.constant 0 : i32
    %2 = vector.broadcast %c0_i32_1 : i32 to vector<8x128xi32>
    %3 = arith.cmpi eq, %0, %2 : vector<8x128xi32>
    %4 = arith.index_cast %c0_i32_1 : i32 to index
    %5 = memref.load %arg1[%4] : memref<10xi32, #tpu.memory_space<smem>>
    %6 = vector.broadcast %5 : i32 to vector<8x128xi32>
    %7 = arith.select %3, %6, %1 : vector<8x128xi1>, vector<8x128xi32>
    %c1_i32 = arith.constant 1 : i32
    %8 = vector.broadcast %c1_i32 : i32 to vector<8x128xi32>
    %9 = arith.cmpi eq, %0, %8 : vector<8x128xi32>
    %10 = arith.index_cast %c1_i32 : i32 to index
    %11 = memref.load %arg1[%10] : memref<10xi32, #tpu.memory_space<smem>>
    %12 = vector.broadcast %11 : i32 to vector<8x128xi32>
    %13 = arith.select %9, %12, %7 : vector<8x128xi1>, vector<8x128xi32>
    %c2_i32 = arith.constant 2 : i32
    %14 = vector.broadcast %c2_i32 : i32 to vector<8x128xi32>
    %15 = arith.cmpi eq, %0, %14 : vector<8x128xi32>
    %16 = arith.index_cast %c2_i32 : i32 to index
    %17 = memref.load %arg1[%16] : memref<10xi32, #tpu.memory_space<smem>>
    %18 = vector.broadcast %17 : i32 to vector<8x128xi32>
    %19 = arith.select %15, %18, %13 : vector<8x128xi1>, vector<8x128xi32>
    %c3_i32 = arith.constant 3 : i32
    %20 = vector.broadcast %c3_i32 : i32 to vector<8x128xi32>
    %21 = arith.cmpi eq, %0, %20 : vector<8x128xi32>
    %22 = arith.index_cast %c3_i32 : i32 to index
    %23 = memref.load %arg1[%22] : memref<10xi32, #tpu.memory_space<smem>>
    %24 = vector.broadcast %23 : i32 to vector<8x128xi32>
    %25 = arith.select %21, %24, %19 : vector<8x128xi1>, vector<8x128xi32>
    %c4_i32 = arith.constant 4 : i32
    %26 = vector.broadcast %c4_i32 : i32 to vector<8x128xi32>
    %27 = arith.cmpi eq, %0, %26 : vector<8x128xi32>
    %28 = arith.index_cast %c4_i32 : i32 to index
    %29 = memref.load %arg1[%28] : memref<10xi32, #tpu.memory_space<smem>>
    %30 = vector.broadcast %29 : i32 to vector<8x128xi32>
    %31 = arith.select %27, %30, %25 : vector<8x128xi1>, vector<8x128xi32>
    %c5_i32 = arith.constant 5 : i32
    %32 = vector.broadcast %c5_i32 : i32 to vector<8x128xi32>
    %33 = arith.cmpi eq, %0, %32 : vector<8x128xi32>
    %34 = arith.index_cast %c5_i32 : i32 to index
    %35 = memref.load %arg1[%34] : memref<10xi32, #tpu.memory_space<smem>>
    %36 = vector.broadcast %35 : i32 to vector<8x128xi32>
    %37 = arith.select %33, %36, %31 : vector<8x128xi1>, vector<8x128xi32>
    %c6_i32 = arith.constant 6 : i32
    %38 = vector.broadcast %c6_i32 : i32 to vector<8x128xi32>
    %39 = arith.cmpi eq, %0, %38 : vector<8x128xi32>
    %40 = arith.index_cast %c6_i32 : i32 to index
    %41 = memref.load %arg1[%40] : memref<10xi32, #tpu.memory_space<smem>>
    %42 = vector.broadcast %41 : i32 to vector<8x128xi32>
    %43 = arith.select %39, %42, %37 : vector<8x128xi1>, vector<8x128xi32>
    %c7_i32 = arith.constant 7 : i32
    %44 = vector.broadcast %c7_i32 : i32 to vector<8x128xi32>
    %45 = arith.cmpi eq, %0, %44 : vector<8x128xi32>
    %46 = arith.index_cast %c7_i32 : i32 to index
    %47 = memref.load %arg1[%46] : memref<10xi32, #tpu.memory_space<smem>>
    %48 = vector.broadcast %47 : i32 to vector<8x128xi32>
    %49 = arith.select %45, %48, %43 : vector<8x128xi1>, vector<8x128xi32>
    %c8_i32 = arith.constant 8 : i32
    %50 = vector.broadcast %c8_i32 : i32 to vector<8x128xi32>
    %51 = arith.cmpi eq, %0, %50 : vector<8x128xi32>
    %52 = arith.index_cast %c8_i32 : i32 to index
    %53 = memref.load %arg1[%52] : memref<10xi32, #tpu.memory_space<smem>>
    %54 = vector.broadcast %53 : i32 to vector<8x128xi32>
    %55 = arith.select %51, %54, %49 : vector<8x128xi1>, vector<8x128xi32>
    %c9_i32 = arith.constant 9 : i32
    %56 = vector.broadcast %c9_i32 : i32 to vector<8x128xi32>
    %57 = arith.cmpi eq, %0, %56 : vector<8x128xi32>
    %58 = arith.index_cast %c9_i32 : i32 to index
    %59 = memref.load %arg1[%58] : memref<10xi32, #tpu.memory_space<smem>>
    %60 = vector.broadcast %59 : i32 to vector<8x128xi32>
    %61 = arith.select %57, %60, %55 : vector<8x128xi1>, vector<8x128xi32>
    %c10_i32 = arith.constant 10 : i32
    %c0_2 = arith.constant 0 : index
    %c0_3 = arith.constant 0 : index
    %62 = vector.load %arg3[%c0_2, %c0_3] : memref<8x128xi32, #tpu.memory_space<vmem>>, vector<8x128xi32>
    tpu.vector_store %arg3[%c0_2, %c0_3], %61 {strides = array<i32>} : memref<8x128xi32, #tpu.memory_space<vmem>>, vector<8x128xi32>,
    return
  }
  func.func @transform_0(%arg0: i32, %arg1: memref<10xi32, #tpu.memory_space<smem>>) -> (i32, i32) {
    %c0_i32 = arith.constant 0 : i32
    %c0_i32_0 = arith.constant 0 : i32
    return %arg0, %c0_i32 : i32, i32
  }
  func.func @transform_1(%arg0: i32, %arg1: memref<10xi32, #tpu.memory_space<smem>>) -> (i32, i32) {
    %c0_i32 = arith.constant 0 : i32
    %c0_i32_0 = arith.constant 0 : i32
    return %arg0, %c0_i32 : i32, i32
  }
}

</mosaic_0001>

<bundles_post_ra>
// kernel: tpu_custom_call.1
= control target key start
LH: loop header
LB: loop body
LE: loop exit
PB: predicated region body
PF: predicated region fallthrough
CT: control target
= control target key end

     0   :  { %s149_s9 = smov [#allocation3]   ;;  %s176_s0 = inlined_call_operand.hbm [shape: s32[10], index: 0, kind: input, shape index: {}]   ;;  %s177_s1 = inlined_call_operand.hbm [shape: s32[8,128], index: 1, kind: input, shape index: {}]   ;;  %s178_s2 = inlined_call_operand.hbm [shape: s32[8,128], index: 2, kind: output, shape index: {}]  }
   0x1   :  { %8 = dma.hbm_to_smem %s176_s0, 16, %s149_s9, [#allocation2] }
   0x2   :  { %143 = dma.done.wait [#allocation2], 16 }
   0x3   :  { %144 = vsyncadd [#allocation2], 4294967280 }
   0x4   :  { %10 = sfence }
   0x5   :  { %11 = vsyncpa [#allocation5], 0 }
   0x6   :  { %12 = vsyncpa [#allocation6], 0  ;;  %s150_s12 = smov [#allocation4]  }
   0x7   :  { %s19_s13 = sshll.u32 %s150_s12, 4  ;;  %s20_s13 = int_to_ptr.vmem [resolvable:$true] %s19_s13 }
   0x8   :  { %s111_s14 = scalar_lea.vmem %s20_s13, 128  ;;  %p116_p1 = scmp.lt.s32.totalorder %s20_s13, %s20_s13 }
   0x9   :  { %p112_p0 = scmp.ne.s32.totalorder %s20_s13, %s111_s14  ;;  %p117_p2 = scmp.lt.s32.totalorder %s111_s14, %s111_s14 }
   0xb   :  { %p118_p3 = por %p117_p2, %p116_p1 }
   0xd   :  { %p119_p4 = pnand %p118_p3, %p112_p0 }
   0xf   :  { %122 = shalt.err (!%p119_p4)
}
  0x10   :  { %22 = dma.hbm_to_vmem [thread:$0]  %s177_s1, 128, %s20_s13, [#allocation5]  }
  0x11   :  { %145 = dma.done.wait [#allocation5], 128  }
  0x12   :  { %146 = vsyncadd [#allocation5], 4294967168  ;;  %s28_s0 = sld [smem:[#allocation3]]  ;;  %v26_v0 = vld [vmem:[#allocation4] sm:$0xff]  ;;  %s151_s25 = smov [#allocation7]  }
  0x13   :  { %s83_s17 = sld [smem:[#allocation3 + $0x1]]  ;;  %vm27_vm0 = vcmp.eq.s32.totalorder %v26_v0, 0  ;;  %vm31_vm1 = vcmp.eq.s32.totalorder %v26_v0, 1  ;;  %vm35_vm2 = vcmp.eq.s32.totalorder %v26_v0, 2  ;;  %vm39_vm3 = vcmp.eq.s32.totalorder %v26_v0, 3  ;;  %s74_s26 = sshll.u32 %s151_s25, 4  ;;  %s75_s26 = int_to_ptr.vmem [resolvable:$true] %s74_s26 }
  0x14   :  { %s84_s18 = sld [smem:[#allocation3 + $0x2]]  ;;  %vm43_vm4 = vcmp.eq.s32.totalorder %v26_v0, 4  ;;  %vm47_vm5 = vcmp.eq.s32.totalorder %v26_v0, 5  ;;  %vm51_vm6 = vcmp.eq.s32.totalorder %v26_v0, 6  ;;  %vm55_vm7 = vcmp.eq.s32.totalorder %v26_v0, 7  ;;  %s123_s27 = scalar_lea.vmem %s75_s26, 128 }
  0x15   :  { %s85_s19 = sld [smem:[#allocation3 + $0x3]]  ;;  %vm59_vm8 = vcmp.eq.s32.totalorder %v26_v0, 8  ;;  %vm63_vm9 = vcmp.eq.s32.totalorder %v26_v0, 9  ;;  %p124_p5 = scmp.ne.s32.totalorder %s75_s26, %s123_s27 }
  0x16   :  { %s86_s20 = sld [smem:[#allocation3 + $0x4]]  ;;  %p128_p6 = scmp.lt.s32.totalorder %s75_s26, %s75_s26 }
  0x17   :  { %s87_s21 = sld [smem:[#allocation3 + $0x5]]  ;;  %p129_p7 = scmp.lt.s32.totalorder %s123_s27, %s123_s27 }
  0x18   :  { %v29_v1 = vstv %s28_s0  ;;  %s88_s22 = sld [smem:[#allocation3 + $0x6]] }
  0x19   :  { %v33_v2 = vstv %s83_s17  ;;  %s89_s23 = sld [smem:[#allocation3 + $0x7]]  ;;  %v30_v3 = vsel %vm27_vm0, %v29_v1, 0  ;;  %p130_p8 = por %p129_p7, %p128_p6 }
  0x1a   :  { %v37_v4 = vstv %s84_s18  ;;  %s90_s1 = sld [smem:[#allocation3 + $0x8]]  ;;  %v34_v5 = vsel %vm31_vm1, %v33_v2, %v30_v3 }
  0x1b   :  { %v41_v6 = vstv %s85_s19  ;;  %s91_s24 = sld [smem:[#allocation3 + $0x9]]  ;;  %v38_v7 = vsel %vm35_vm2, %v37_v4, %v34_v5  ;;  %p131_p9 = pnand %p130_p8, %p124_p5 }
  0x1c   :  { %v45_v8 = vstv %s86_s20  ;;  %v42_v9 = vsel %vm39_vm3, %v41_v6, %v38_v7 }
  0x1d   :  { %v49_v10 = vstv %s87_s21  ;;  %v46_v11 = vsel %vm43_vm4, %v45_v8, %v42_v9 }
  0x1e   :  { %v53_v12 = vstv %s88_s22  ;;  %v50_v13 = vsel %vm47_vm5, %v49_v10, %v46_v11 }
  0x1f   :  { %v57_v14 = vstv %s89_s23  ;;  %v54_v15 = vsel %vm51_vm6, %v53_v12, %v50_v13 }
  0x20   :  { %v61_v16 = vstv %s90_s1  ;;  %v58_v17 = vsel %vm55_vm7, %v57_v14, %v54_v15 }
  0x21   :  { %v65_v18 = vstv %s91_s24  ;;  %v62_v19 = vsel %vm59_vm8, %v61_v16, %v58_v17 }
  0x22   :  { %v66_v20 = vsel %vm63_vm9, %v65_v18, %v62_v19 }
  0x23   :  { %67 = vst [vmem:[#allocation7] sm:$0xff] %v66_v20 }
  0x24   :  { %134 = shalt.err (!%p131_p9)
}
  0x25   :  { %77 = dma.vmem_to_hbm [thread:$0]  %s75_s26, 128, %s178_s2, [#allocation6]  }
  0x26   :  { %147 = dma.done.wait [#allocation6], 128  }
  0x27   :  { %148 = vsyncadd [#allocation6], 4294967168 }
  0x28   :  { %81 = vsyncpa [#allocation5], 1 }
  0x29   :  { %82 = vsyncpa [#allocation6], 1 }

</bundles_post_ra>
